<compile_context>
chip_gen: v6e
topology: v6e:2x2x1
jax: 0.10.0
libtpu: 0.0.40
codegen_flags: <defaults>
</compile_context>

<pallas_src>
import functools

import jax
import jax.numpy as jnp
from jax import lax
from jax.experimental import pallas as pl
from jax.experimental.pallas import tpu as pltpu

_EPS = 1e-12  # matches torch.nn.functional.normalize default eps

# Target per-buffer block size. Big enough to amortize the ~0.35 us per-grid-step
# overhead (measured ~85% of HBM roofline at 512+ row tiles), small enough that the
# double-buffered in+out footprint (4 buffers ~= 8 MiB) fits the default scoped
# VMEM limit on every generation (16 MiB v5e, 32 MiB v6e/v7x).
_TARGET_BLOCK_BYTES = 2 * 1024 * 1024


def _sublane_multiple(dtype) -> int:
    # Sub-32-bit dtypes pack along sublanes: f32 -> 8, bf16/f16 -> 16, int8/fp8 -> 32.
    itemsize = jnp.dtype(dtype).itemsize
    return max(8, 8 * (4 // max(1, itemsize)))


def _l2_normalize_kernel(x_ref, o_ref, *, groups, feat):
    # x_ref / o_ref: (TILE_ROWS, groups * feat) lane-dense block in VMEM.
    # Each vreg row holds `groups` logical feature rows of length `feat`.
    x = x_ref[...].astype(jnp.float32)
    eps_sq = jnp.float32(_EPS * _EPS)
    if groups == 1:
        sq = jnp.sum(x * x, axis=-1, keepdims=True)
        # rsqrt(max(s, eps^2)) == 1 / max(sqrt(s), eps) for s >= 0; transcendental
        # goes to the EUP slot and the per-element divide becomes a multiply.
        inv = lax.rsqrt(jnp.maximum(sq, eps_sq))
        o_ref[...] = (x * inv).astype(o_ref.dtype)
    else:
        t = x.shape[0]
        xg = x.reshape(t, groups, feat)
        sq = jnp.sum(xg * xg, axis=-1, keepdims=True)          # (t, groups, 1)
        inv = lax.rsqrt(jnp.maximum(sq, eps_sq))
        y = (xg * inv).reshape(t, groups * feat)               # lane-dense store slab
        o_ref[...] = y.astype(o_ref.dtype)


def l2_normalize_last_dim(x):
    """Equivalent of F.normalize(x, p=2, dim=-1) as a Pallas TPU kernel."""
    orig_shape = x.shape
    d = orig_shape[-1]
    x2 = x.reshape(-1, d)
    n = x2.shape[0]

    # Lane-dense packing: when D divides 128 (and the row count permits it), view
    # g = 128 // D consecutive rows as one 128-wide row so every load/store uses
    # all 128 lanes. The reshape below is metadata-only (contiguous), no HBM copy.
    groups = 1
    if d < 128 and 128 % d == 0 and n % (128 // d) == 0:
        groups = 128 // d
    width = groups * d
    n_rows = n // groups
    xp = x2.reshape(n_rows, width)

    sub = _sublane_multiple(x.dtype)
    itemsize = jnp.dtype(x.dtype).itemsize
    # Rows per tile targeting ~_TARGET_BLOCK_BYTES, rounded to the sublane multiple.
    tile_rows = max(sub, (_TARGET_BLOCK_BYTES // (width * itemsize)) // sub * sub)
    if tile_rows >= n_rows:
        # Tiny input: one block covering the whole array (block == full array dims,
        # so no (8,128) divisibility requirement and no oversized VMEM allocation).
        tile_rows = n_rows

    grid = (pl.cdiv(n_rows, tile_rows),)  # ragged last block masked by Pallas

    kernel = functools.partial(_l2_normalize_kernel, groups=groups, feat=d)
    out = pl.pallas_call(
        kernel,
        out_shape=jax.ShapeDtypeStruct((n_rows, width), x.dtype),
        grid_spec=pltpu.PrefetchScalarGridSpec(
            num_scalar_prefetch=0,
            grid=grid,
            in_specs=[pl.BlockSpec((tile_rows, width), lambda i: (i, 0))],
            out_specs=pl.BlockSpec((tile_rows, width), lambda i: (i, 0)),
        ),
        compiler_params=pltpu.CompilerParams(
            # Row blocks are independent -> megacore sharding on v7x (2 TCs).
            dimension_semantics=("parallel",),
        ),
    )(xp)

    return out.reshape(orig_shape)


def normalization_forward(audio, video):
    """Forward pass of the PyTorch `Normalization` module."""
    # NOTE: audio and video have different feature dims (different per-row group
    # packing), so they are kept as two independent parallel-grid kernel calls.
    return l2_normalize_last_dim(audio), l2_normalize_last_dim(video)


if __name__ == "__main__":
    key = jax.random.PRNGKey(0)
    ka, kv = jax.random.split(key)

    # Small synthetic shapes: (batch, seq, feature) — feature-last layout.
    audio = jax.random.normal(ka, (2, 8, 32), dtype=jnp.float32)
    video = jax.random.normal(kv, (2, 8, 64), dtype=jnp.float32)

    audio_n, video_n = normalization_forward(audio, video)
    jax.block_until_ready(audio_n)
    jax.block_until_ready(video_n)

    # Reference check against plain JAX implementation of F.normalize.
    def ref(x):
        xf = x.astype(jnp.float32)
        norm = jnp.sqrt(jnp.sum(xf * xf, axis=-1, keepdims=True))
        return (xf / jnp.maximum(norm, _EPS)).astype(x.dtype)

    assert jnp.allclose(audio_n, ref(audio), atol=1e-5, rtol=1e-5)
    assert jnp.allclose(video_n, ref(video), atol=1e-5, rtol=1e-5)

    print("KERNEL_OK")
</pallas_src>

<mosaic_0001>
module attributes {stable_mosaic.version = 11 : i64} {
  func.func @_l2_normalize_kernel(%arg0: i32, %arg1: memref<4x128xf32, #tpu.memory_space<vmem>>, %arg2: memref<4x128xf32, #tpu.memory_space<vmem>>) attributes {dimension_semantics = [#tpu.dimension_semantics<parallel>], iteration_bounds = array<i64: 1>, scalar_prefetch = 0 : i64, scratch_operands = 0 : i64, tpu.core_type = #tpu.core_type<tc>, window_params = [{transform_indices = @transform_0, window_bounds = array<i64: 4, 128>}, {transform_indices = @transform_1, window_bounds = array<i64: 4, 128>}]} {
    %c0 = arith.constant 0 : index
    %c0_0 = arith.constant 0 : index
    %0 = vector.load %arg1[%c0, %c0_0] : memref<4x128xf32, #tpu.memory_space<vmem>>, vector<4x128xf32>
    %1 = vector.shape_cast %0 : vector<4x128xf32> to vector<4x4x32xf32>
    %2 = arith.mulf %1, %1 : vector<4x4x32xf32>
    %cst = arith.constant dense<0.000000e+00> : vector<4x4xf32>
    %3 = vector.multi_reduction <add>, %2, %cst [2] : vector<4x4x32xf32> to vector<4x4xf32>
    %4 = vector.shape_cast %3 : vector<4x4xf32> to vector<4x4x1xf32>
    %cst_1 = arith.constant 1.000000e-24 : f32
    %5 = vector.broadcast %cst_1 : f32 to vector<4x4x1xf32>
    %6 = arith.maximumf %4, %5 : vector<4x4x1xf32>
    %7 = math.rsqrt %6 : vector<4x4x1xf32>
    %8 = vector.broadcast %7 : vector<4x4x1xf32> to vector<4x4x32xf32>
    %9 = arith.mulf %1, %8 : vector<4x4x32xf32>
    %10 = vector.shape_cast %9 : vector<4x4x32xf32> to vector<4x128xf32>
    %c0_2 = arith.constant 0 : index
    %c0_3 = arith.constant 0 : index
    %11 = vector.load %arg2[%c0_2, %c0_3] : memref<4x128xf32, #tpu.memory_space<vmem>>, vector<4x128xf32>
    tpu.vector_store %arg2[%c0_2, %c0_3], %10 {strides = array<i32>} : memref<4x128xf32, #tpu.memory_space<vmem>>, vector<4x128xf32>,
    return
  }
  func.func @transform_0(%arg0: i32) -> (i32, i32) {
    %c0_i32 = arith.constant 0 : i32
    %c0_i32_0 = arith.constant 0 : i32
    return %arg0, %c0_i32 : i32, i32
  }
  func.func @transform_1(%arg0: i32) -> (i32, i32) {
    %c0_i32 = arith.constant 0 : i32
    %c0_i32_0 = arith.constant 0 : i32
    return %arg0, %c0_i32 : i32, i32
  }
}

</mosaic_0001>

<bundles_post_ra>
// kernel: tpu_custom_call.1
= control target key start
LH: loop header
LB: loop body
LE: loop exit
PB: predicated region body
PF: predicated region fallthrough
CT: control target
= control target key end

     0   :  { %6 = vsyncpa [#allocation3], 0  ;;  %s253_s0 = inlined_call_operand.hbm [shape: f32[4,128], index: 0, kind: input, shape index: {}]   ;;  %s254_s1 = inlined_call_operand.hbm [shape: f32[4,128], index: 1, kind: output, shape index: {}]  }
   0x1   :  { %7 = vsyncpa [#allocation4], 0  ;;  %s223_s6 = smov [#allocation2]  }
   0x2   :  { %s14_s7 = sshll.u32 %s223_s6, 4  ;;  %s15_s7 = int_to_ptr.vmem [resolvable:$true] %s14_s7 }
   0x3   :  { %s187_s8 = scalar_lea.vmem %s15_s7, 64  ;;  %p192_p1 = scmp.lt.s32.totalorder %s15_s7, %s15_s7 }
   0x4   :  { %p188_p0 = scmp.ne.s32.totalorder %s15_s7, %s187_s8  ;;  %p193_p2 = scmp.lt.s32.totalorder %s187_s8, %s187_s8 }
   0x6   :  { %p194_p3 = por %p193_p2, %p192_p1 }
   0x8   :  { %p195_p4 = pnand %p194_p3, %p188_p0 }
   0xa   :  { %198 = shalt.err (!%p195_p4)
}
   0xb   :  { %17 = dma.hbm_to_vmem [thread:$0]  %s253_s0, 64, %s15_s7, [#allocation3]  }
   0xc   :  { %219 = dma.done.wait [#allocation3], 64  }
   0xd   :  { %220 = vsyncadd [#allocation3], 4294967232  ;;  %v21_v0 = vld [vmem:[#allocation2] sm:$0xf]  ;;  %s224_s11 = smov 32   ;;  %s225_s12 = smov 96   ;;  %v36_v3 = vlaneseq }
   0xe   :  { %29 = vrot.lane.b32.xlu1 %v21_v0, %s224_s11  ;;  %23 = vrot.lane.b32.xlu0 %v21_v0, %s225_s12  ;;  %s226_s13 = smov 64   ;;  %v227_v1 = vmov 1983009808   ;;  %v228_v6 = vmov 1934713408   ;;  %vm70_vm0 = vcmask 257024  }
   0xf   :  { %v34_v2 = vunpack.c.l.s4 %v227_v1  ;;  %v37_v5 = vshrl.u32 %v36_v3, 7  ;;  %v51_v7 = vunpack.c.l.s4 %v228_v6  ;;  %v229_v23 = vmov 0.0   ;;  %s230_s0 = smov [#allocation5]  }
  0x10   :  { %vm141_vm1 = vcmask 261120   ;;  %vm143_vm2 = vcmask 523264   ;;  %s154_s14 = sshll.u32 %s230_s0, 4  ;;  %vm145_vm3 = vcmask 785408   ;;  %s155_s14 = int_to_ptr.vmem [resolvable:$true] %s154_s14 }
  0x11   :  { %v35_v4 = vunpack.c.0.s8 %v34_v2  ;;  %v52_v12 = vunpack.c.0.s8 %v51_v7  ;;  %s199_s15 = scalar_lea.vmem %s155_s14, 64  ;;  %p204_p6 = scmp.lt.s32.totalorder %s155_s14, %s155_s14 }
  0x12   :  { %26 = vrot.lane.b32.xlu0 %v21_v0, %s226_s13  ;;  %p200_p5 = scmp.ne.s32.totalorder %s155_s14, %s199_s15  ;;  %p205_p7 = scmp.lt.s32.totalorder %s199_s15, %s199_s15 }
  0x13   :  { %v38_v10 = vsub.s32 %v35_v4, %v37_v5  ;;  %v55_v16 = vsub.s32 %v52_v12, %v37_v5 }
  0x14   :  { %p206_p8 = por %p205_p7, %p204_p6 }
  0x16   :  { %p207_p9 = pnand %p206_p8, %p200_p5 }
  0x80   :  { %v30_v8 = vpop.permute.xlu1 %29  ;;  %v24_v9 = vpop.permute.xlu0 %23 }
  0x81   :  { %v40_v11 = vcombine.low %v24_v9, %v30_v8 }
  0x83   :  { %v47_v15 = vrot.slane %v40_v11, %v38_v10 }
  0x84   :  { %v27_v13 = vpop.permute.xlu0 %26 }
  0x85   :  { %v32_v14 = vcombine.low %v21_v0, %v27_v13 }
  0x87   :  { %v39_v17 = vrot.slane %v32_v14, %v38_v10 }
  0x89   :  { %v48_v18 = vcombine.low %v39_v17, %v47_v15  ;;  %v49_v19 = vcombine.high %v39_v17, %v47_v15 }
  0x8b   :  { %v56_v20 = vrot.slane %v48_v18, %v55_v16  ;;  %v63_v21 = vrot.slane %v49_v19, %v55_v16 }
  0x8d   :  { %v66_v22 = vmul.f32 %v56_v20, %v56_v20  ;;  %v64_v24 = vcombine.high %v56_v20, %v229_v23  ;;  %v65_v25 = vcombine.high %v63_v21, %v229_v23  ;;  %v68_v30 = vmul.f32 %v63_v21, %v63_v21 }
  0x8f   :  { %v71_v26 = vsel %vm70_vm0, %v66_v22, 0.0  ;;  %v67_v27 = vmul.f32 %v64_v24, %v64_v24  ;;  %v69_v28 = vmul.f32 %v65_v25, %v65_v25  ;;  %v77_v32 = vsel %vm70_vm0, %v68_v30, 0.0 }
  0x90   :  { %72 = vadd.xlane.f32.xlu1 %v71_v26 }
  0x91   :  { %v74_v29 = vsel %vm70_vm0, %v67_v27, 0.0  ;;  %v80_v31 = vsel %vm70_vm0, %v69_v28, 0.0 }
  0x92   :  { %75 = vadd.xlane.f32.xlu0 %v74_v29 }
  0x94   :  { %81 = vadd.xlane.f32.xlu1 %v80_v31 }
  0x96   :  { %78 = vadd.xlane.f32.xlu0 %v77_v32 }
 0x119   :  { %v73_v33 = vpop.xlane.xlu1 %72 }
 0x11a   :  { %v83_v34 = vmax.f32 %v73_v33, 1e-24 }
 0x11b   :  { %v76_v35 = vpop.xlane.xlu0 %75 }
 0x11c   :  { %v84_v36 = vmax.f32 %v76_v35, 1e-24 }
 0x11d   :  { %v82_v37 = vpop.xlane.xlu1 %81 }
 0x11e   :  { %171 = vrsqrt.f32 %v84_v36  ;;  %v86_v38 = vmax.f32 %v82_v37, 1e-24 }
 0x11f   :  { %173 = vrsqrt.f32 %v83_v34  ;;  %v79_v39 = vpop.xlane.xlu0 %78 }
 0x120   :  { %175 = vrsqrt.f32 %v86_v38  ;;  %v85_v40 = vmax.f32 %v79_v39, 1e-24 }
 0x122   :  { %177 = vrsqrt.f32 %v85_v40 }
 0x12b   :  { %v172_v41 = vpop.eup %171 }
 0x12c   :  { %v174_v42 = vpop.eup %173  ;;  %v92_v44 = vmul.f32 %v172_v41, %v64_v24 }
 0x12d   :  { %v176_v43 = vpop.eup %175  ;;  %v91_v47 = vmul.f32 %v174_v42, %v56_v20 }
 0x12e   :  { %v94_v45 = vmul.f32 %v176_v43, %v65_v25 }
 0x12f   :  { %v178_v46 = vpop.eup %177 }
 0x130   :  { %v93_v48 = vmul.f32 %v178_v46, %v63_v21  ;;  %v103_v49 = vcombine.low %v92_v44, %v94_v45 }
 0x132   :  { %v95_v50 = vcombine.low %v91_v47, %v93_v48  ;;  %v110_v52 = vrot.slane %v103_v49, %v38_v10 }
 0x134   :  { %v102_v51 = vrot.slane %v95_v50, %v38_v10 }
 0x136   :  { %v112_v53 = vcombine.high %v102_v51, %v110_v52  ;;  %v111_v54 = vcombine.low %v102_v51, %v110_v52 }
 0x138   :  { %v126_v55 = vrot.slane %v112_v53, %v55_v16  ;;  %v119_v56 = vrot.slane %v111_v54, %v55_v16 }
 0x13a   :  { %134 = vrot.lane.b32.xlu1 %v126_v55, %s226_s13  ;;  %v127_v57 = vcombine.high %v119_v56, %v229_v23  ;;  %v128_v58 = vcombine.high %v126_v55, %v229_v23 }
 0x13c   :  { %130 = vrot.lane.b32.xlu0 %v127_v57, %s224_s11 }
 0x13e   :  { %138 = vrot.lane.b32.xlu1 %v128_v58, %s225_s12 }
 0x1ac   :  { %v135_v59 = vpop.permute.xlu1 %134 }
 0x1ae   :  { %v131_v60 = vpop.permute.xlu0 %130 }
 0x1af   :  { %v142_v61 = vsel %vm141_vm1, %v119_v56, %v131_v60 }
 0x1b0   :  { %v139_v62 = vpop.permute.xlu1 %138  ;;  %v144_v63 = vsel %vm143_vm2, %v142_v61, %v135_v59 }
 0x1b1   :  { %v146_v0 = vsel %vm145_vm3, %v144_v63, %v139_v62 }
 0x1b2   :  { %147 = vst [vmem:[#allocation5] sm:$0xf] %v146_v0 }
 0x1b3   :  { %210 = shalt.err (!%p207_p9)
}
 0x1b4   :  { %157 = dma.vmem_to_hbm [thread:$0]  %s155_s14, 64, %s254_s1, [#allocation4]  }
 0x1b5   :  { %221 = dma.done.wait [#allocation4], 64  }
 0x1b6   :  { %222 = vsyncadd [#allocation4], 4294967232 }
 0x1b7   :  { %161 = vsyncpa [#allocation3], 1 }
 0x1b8   :  { %162 = vsyncpa [#allocation4], 1 }

</bundles_post_ra>
